<compile_context>
chip_gen: v5e
topology: v5e:2x2
jax: 0.10.0
libtpu: 0.0.40
codegen_flags: <defaults>
</compile_context>

<pallas_src>
import functools

import jax
import jax.numpy as jnp
from jax.experimental import pallas as pl
from jax.experimental.pallas import tpu as pltpu

_HIDDEN = 128      # fc1 output width (fixed by the module)
_K_PAD = 128       # class dim padded to one full lane width
_NEG_BIG = -1e30   # logits of padded classes -> exp() underflows to 0


def _round_up(a, b):
    return ((a + b - 1) // b) * b


def _pick_batch_tile(B, D):
    """Batch tile: multiple of 16, ~4 MiB of f32 x per pipeline buffer."""
    per_buf_budget = 4 * 1024 * 1024                      # bytes of x per buffer
    tb_vmem = max(16, (per_buf_budget // (D * 4)) // 16 * 16)
    tb = min(2048, tb_vmem, _round_up(B, 16))
    # Guarantee >= 2 grid tiles for v7x dual-TensorCore sharding whenever the
    # batch is large enough that each half-tile is still efficient.
    if B >= 512 and _round_up(B, 16) <= tb:
        tb = _round_up((B + 1) // 2, 16)
    return tb


def _fcnn_kernel(x_ref, w1_ref, b1_ref, w2_ref, b2_ref, o_ref):
    """Fused fc1 + ReLU + fc2 + softmax over one (TB, D) batch tile."""
    # Per-tile cast: x streams from HBM as f32, bf16 only for the MXU operand.
    x = x_ref[...].astype(jnp.bfloat16)

    # fc1: bf16 operands, f32 accumulation on the MXU.
    h = jnp.dot(x, w1_ref[...], preferred_element_type=jnp.float32)
    h = jnp.maximum(h + b1_ref[...], 0.0)                  # (TB, 128)

    # fc2 on the K-padded (128, 128) bf16 weight; padded cols carry -1e30 bias.
    z = jnp.dot(h.astype(jnp.bfloat16), w2_ref[...],
                preferred_element_type=jnp.float32)
    z = z + b2_ref[...]                                     # (TB, 128) f32

    # Numerically stable softmax along the (padded) class axis.
    z_max = jnp.max(z, axis=-1, keepdims=True)
    e = jnp.exp(z - z_max)                                  # padded cols -> 0
    denom = jnp.sum(e, axis=-1, keepdims=True)
    o_ref[...] = (e / denom).astype(o_ref.dtype)            # bf16 writeback


@functools.partial(jax.jit, static_argnames=("input_dim",))
def fcnn_forward(x_nchw, w1, b1, w2, b2, *, input_dim):
    """FCNN forward.  x_nchw: (B, C, H, W) with C*H*W == input_dim."""
    B = x_nchw.shape[0]
    D = input_dim
    H = w1.shape[0]                                          # 128
    K = w2.shape[0]
    assert H == _HIDDEN
    assert K <= _K_PAD

    # --- glue: flatten (free bitcast-style reshape) + batch tiling ----------
    x = x_nchw.reshape(B, D).astype(jnp.float32)             # stays f32
    TB = _pick_batch_tile(B, D)
    B_pad = _round_up(B, TB)
    if B_pad != B:
        # Zero-padded rows flow through relu/softmax as finite values and are
        # sliced off below; no NaN/Inf risk.  Only materialized when needed.
        x = jnp.pad(x, ((0, B_pad - B), (0, 0)))

    # --- parameter prep (tiny, one-time) -------------------------------------
    w1_t = w1.T.astype(jnp.bfloat16)                         # (D, 128)
    b1_2d = b1.reshape(1, H).astype(jnp.float32)

    # Pad the class dim to 128 lanes: zero weight columns, -1e30 bias so the
    # padded logits contribute exactly zero softmax mass.
    w2_t = (jnp.zeros((H, _K_PAD), jnp.float32)
            .at[:, :K].set(w2.T.astype(jnp.float32))
            .astype(jnp.bfloat16))
    b2_2d = jnp.full((1, _K_PAD), _NEG_BIG, jnp.float32).at[0, :K].set(
        b2.astype(jnp.float32))

    n_tiles = B_pad // TB
    cost = pl.CostEstimate(
        flops=2 * B_pad * D * H + 2 * B_pad * H * _K_PAD,
        transcendentals=B_pad * _K_PAD,
        bytes_accessed=(B_pad * D * 4 + D * H * 2 + H * _K_PAD * 2
                        + H * 4 + _K_PAD * 4 + B_pad * _K_PAD * 2),
    )

    out_p = pl.pallas_call(
        _fcnn_kernel,
        out_shape=jax.ShapeDtypeStruct((B_pad, _K_PAD), jnp.bfloat16),
        grid_spec=pltpu.PrefetchScalarGridSpec(
            num_scalar_prefetch=0,
            grid=(n_tiles,),
            in_specs=[
                pl.BlockSpec((TB, D), lambda i: (i, 0)),       # x (f32, streamed)
                pl.BlockSpec((D, H), lambda i: (0, 0)),        # W1^T bf16 (resident)
                pl.BlockSpec((1, H), lambda i: (0, 0)),        # b1 f32
                pl.BlockSpec((H, _K_PAD), lambda i: (0, 0)),   # W2^T bf16 padded
                pl.BlockSpec((1, _K_PAD), lambda i: (0, 0)),   # b2 f32 padded
            ],
            out_specs=pl.BlockSpec((TB, _K_PAD), lambda i: (i, 0)),
        ),
        compiler_params=pltpu.CompilerParams(
            dimension_semantics=("parallel",),                 # v7x dual-TC
            vmem_limit_bytes=32 * 1024 * 1024),
        cost_estimate=cost,
    )(x, w1_t, b1_2d, w2_t, b2_2d)

    # Strip batch padding and padded class columns; upcast for f32 consumers.
    return out_p[:B, :K].astype(jnp.float32)


def init_fcnn_params(key, input_dim, hidden, K):
    """Deterministic PyTorch-style (Kaiming-uniform bound) Linear init."""
    k1, k2, k3, k4 = jax.random.split(key, 4)
    bound1 = 1.0 / jnp.sqrt(input_dim)
    bound2 = 1.0 / jnp.sqrt(hidden)
    w1 = jax.random.uniform(k1, (hidden, input_dim), jnp.float32, -bound1, bound1)
    b1 = jax.random.uniform(k2, (hidden,), jnp.float32, -bound1, bound1)
    w2 = jax.random.uniform(k3, (K, hidden), jnp.float32, -bound2, bound2)
    b2 = jax.random.uniform(k4, (K,), jnp.float32, -bound2, bound2)
    return w1, b1, w2, b2


if __name__ == "__main__":
    # Small shapes consistent with the module: B=2, C=4, H=W=16 -> input_dim=1024.
    B, C, Himg, Wimg = 2, 4, 16, 16
    input_dim = C * Himg * Wimg                              # 1024
    hidden, K = 128, 8

    key = jax.random.PRNGKey(0)
    kx, kp = jax.random.split(key)
    x = jax.random.normal(kx, (B, C, Himg, Wimg), jnp.float32)
    w1, b1, w2, b2 = init_fcnn_params(kp, input_dim, hidden, K)

    y = fcnn_forward(x, w1, b1, w2, b2, input_dim=input_dim)
    y = jax.block_until_ready(y)

    # Sanity: shape + softmax rows sum to ~1 (bf16 output rounding).
    assert y.shape == (B, K)
    assert jnp.allclose(jnp.sum(y, axis=1), 1.0, atol=1e-2)

    # Cross-check against plain-JAX f32 reference (loose tol: bf16 matmul paths).
    x_flat = x.reshape(B, input_dim)
    h_ref = jnp.maximum(x_flat @ w1.T + b1, 0.0)
    z_ref = h_ref @ w2.T + b2
    y_ref = jax.nn.softmax(z_ref, axis=1)
    assert jnp.allclose(y, y_ref, atol=2e-2)

    print("KERNEL_OK")
</pallas_src>

<mosaic_0001>
module attributes {stable_mosaic.version = 11 : i64} {
  func.func @_fcnn_kernel(%arg0: i32, %arg1: memref<16x1024xf32, #tpu.memory_space<vmem>>, %arg2: memref<1024x128xbf16, #tpu.memory_space<vmem>>, %arg3: memref<1x128xf32, #tpu.memory_space<vmem>>, %arg4: memref<128x128xbf16, #tpu.memory_space<vmem>>, %arg5: memref<1x128xf32, #tpu.memory_space<vmem>>, %arg6: memref<16x128xbf16, #tpu.memory_space<vmem>>) attributes {dimension_semantics = [#tpu.dimension_semantics<parallel>], iteration_bounds = array<i64: 1>, scalar_prefetch = 0 : i64, scratch_operands = 0 : i64, tpu.core_type = #tpu.core_type<tc>, window_params = [{transform_indices = @transform_0, window_bounds = array<i64: 16, 1024>}, {pipeline_mode = #tpu.pipeline_mode<synchronous>, transform_indices = @transform_1, window_bounds = array<i64: 1024, 128>}, {pipeline_mode = #tpu.pipeline_mode<synchronous>, transform_indices = @transform_2, window_bounds = array<i64: 1, 128>}, {pipeline_mode = #tpu.pipeline_mode<synchronous>, transform_indices = @transform_3, window_bounds = array<i64: 128, 128>}, {pipeline_mode = #tpu.pipeline_mode<synchronous>, transform_indices = @transform_4, window_bounds = array<i64: 1, 128>}, {transform_indices = @transform_5, window_bounds = array<i64: 16, 128>}]} {
    %c0 = arith.constant 0 : index
    %c0_0 = arith.constant 0 : index
    %0 = vector.load %arg1[%c0, %c0_0] : memref<16x1024xf32, #tpu.memory_space<vmem>>, vector<16x1024xf32>
    %1 = arith.truncf %0 : vector<16x1024xf32> to vector<16x1024xbf16>
    %c0_1 = arith.constant 0 : index
    %c0_2 = arith.constant 0 : index
    %2 = vector.load %arg2[%c0_1, %c0_2] : memref<1024x128xbf16, #tpu.memory_space<vmem>>, vector<1024x128xbf16>
    %cst = arith.constant dense<0.000000e+00> : vector<16x128xf32>
    %3 = tpu.matmul %1, %2, %cst {dimension_numbers = #tpu.dot_dimension_numbers<[1], [0], [0], [1], [0, 0, 1, 1], [], []>} : vector<16x1024xbf16>, vector<1024x128xbf16>, vector<16x128xf32> -> vector<16x128xf32>
    %c0_3 = arith.constant 0 : index
    %c0_4 = arith.constant 0 : index
    %4 = vector.load %arg3[%c0_3, %c0_4] : memref<1x128xf32, #tpu.memory_space<vmem>>, vector<1x128xf32>
    %5 = vector.broadcast %4 : vector<1x128xf32> to vector<16x128xf32>
    %6 = arith.addf %3, %5 : vector<16x128xf32>
    %cst_5 = arith.constant 0.000000e+00 : f32
    %7 = vector.broadcast %cst_5 : f32 to vector<16x128xf32>
    %8 = arith.maximumf %6, %7 : vector<16x128xf32>
    %9 = arith.truncf %8 : vector<16x128xf32> to vector<16x128xbf16>
    %c0_6 = arith.constant 0 : index
    %c0_7 = arith.constant 0 : index
    %10 = vector.load %arg4[%c0_6, %c0_7] : memref<128x128xbf16, #tpu.memory_space<vmem>>, vector<128x128xbf16>
    %cst_8 = arith.constant dense<0.000000e+00> : vector<16x128xf32>
    %11 = tpu.matmul %9, %10, %cst_8 {dimension_numbers = #tpu.dot_dimension_numbers<[1], [0], [0], [1], [0, 0, 1, 1], [], []>} : vector<16x128xbf16>, vector<128x128xbf16>, vector<16x128xf32> -> vector<16x128xf32>
    %c0_9 = arith.constant 0 : index
    %c0_10 = arith.constant 0 : index
    %12 = vector.load %arg5[%c0_9, %c0_10] : memref<1x128xf32, #tpu.memory_space<vmem>>, vector<1x128xf32>
    %13 = vector.broadcast %12 : vector<1x128xf32> to vector<16x128xf32>
    %14 = arith.addf %11, %13 : vector<16x128xf32>
    %cst_11 = arith.constant dense<0xFF800000> : vector<16xf32>
    %15 = vector.multi_reduction <maximumf>, %14, %cst_11 [1] : vector<16x128xf32> to vector<16xf32>
    %16 = vector.shape_cast %15 : vector<16xf32> to vector<16x1xf32>
    %17 = vector.broadcast %16 : vector<16x1xf32> to vector<16x128xf32>
    %18 = arith.subf %14, %17 : vector<16x128xf32>
    %19 = math.exp %18 : vector<16x128xf32>
    %cst_12 = arith.constant dense<0.000000e+00> : vector<16xf32>
    %20 = vector.multi_reduction <add>, %19, %cst_12 [1] : vector<16x128xf32> to vector<16xf32>
    %21 = vector.shape_cast %20 : vector<16xf32> to vector<16x1xf32>
    %22 = vector.broadcast %21 : vector<16x1xf32> to vector<16x128xf32>
    %23 = arith.divf %19, %22 : vector<16x128xf32>
    %24 = arith.truncf %23 : vector<16x128xf32> to vector<16x128xbf16>
    %c0_13 = arith.constant 0 : index
    %c0_14 = arith.constant 0 : index
    %25 = vector.load %arg6[%c0_13, %c0_14] : memref<16x128xbf16, #tpu.memory_space<vmem>>, vector<16x128xbf16>
    tpu.vector_store %arg6[%c0_13, %c0_14], %24 {strides = array<i32>} : memref<16x128xbf16, #tpu.memory_space<vmem>>, vector<16x128xbf16>,
    return
  }
  func.func @transform_0(%arg0: i32) -> (i32, i32) {
    %c0_i32 = arith.constant 0 : i32
    %c0_i32_0 = arith.constant 0 : i32
    return %arg0, %c0_i32 : i32, i32
  }
  func.func @transform_1(%arg0: i32) -> (i32, i32) {
    %c0_i32 = arith.constant 0 : i32
    %c0_i32_0 = arith.constant 0 : i32
    %c0_i32_1 = arith.constant 0 : i32
    return %c0_i32, %c0_i32_0 : i32, i32
  }
  func.func @transform_2(%arg0: i32) -> (i32, i32) {
    %c0_i32 = arith.constant 0 : i32
    %c0_i32_0 = arith.constant 0 : i32
    %c0_i32_1 = arith.constant 0 : i32
    return %c0_i32, %c0_i32_0 : i32, i32
  }
  func.func @transform_3(%arg0: i32) -> (i32, i32) {
    %c0_i32 = arith.constant 0 : i32
    %c0_i32_0 = arith.constant 0 : i32
    %c0_i32_1 = arith.constant 0 : i32
    return %c0_i32, %c0_i32_0 : i32, i32
  }
  func.func @transform_4(%arg0: i32) -> (i32, i32) {
    %c0_i32 = arith.constant 0 : i32
    %c0_i32_0 = arith.constant 0 : i32
    %c0_i32_1 = arith.constant 0 : i32
    return %c0_i32, %c0_i32_0 : i32, i32
  }
  func.func @transform_5(%arg0: i32) -> (i32, i32) {
    %c0_i32 = arith.constant 0 : i32
    %c0_i32_0 = arith.constant 0 : i32
    return %arg0, %c0_i32 : i32, i32
  }
}

</mosaic_0001>

<bundles_post_ra>
// kernel: fcnn_forward.1
= control target key start
LH: loop header
LB: loop body
LE: loop exit
PB: predicated region body
PF: predicated region fallthrough
CT: control target
= control target key end

     0   :  { %s1487_s1 = inlined_call_operand.vmem [shape: bf16[1024,128], index: 1, kind: input, shape index: {}]   ;;  %s1488_s2 = inlined_call_operand.vmem [shape: f32[1,128], index: 2, kind: input, shape index: {}]   ;;  %s1489_s0 = inlined_call_operand.vmem [shape: f32[16,1024], index: 0, kind: input, shape index: {}]   ;;  %s1490_s4 = inlined_call_operand.vmem [shape: f32[1,128], index: 4, kind: input, shape index: {}]   ;;  %s1491_s3 = inlined_call_operand.vmem [shape: bf16[128,128], index: 3, kind: input, shape index: {}]   ;;  %s1492_s5 = inlined_call_operand.vmem [shape: bf16[16,128], index: 5, kind: output, shape index: {}]  }
   0x1   :  { %v1104_v0 = vld [vmem:[%s1487_s1 + $0x38] sm:$0xff]  ;;  %v1103_v4 = vld [vmem:[%s1487_s1 + $0x30] sm:$0xff]  ;;  %v1102_v8 = vld [vmem:[%s1487_s1 + $0x28] sm:$0xff] }
   0x2   :  { %v1112_v1 = vld [vmem:[%s1487_s1 + $0x78] sm:$0xff]  ;;  %560 = vmatpush.bf16.msra.mxu0 %v1104_v0  ;;  %v1111_v5 = vld [vmem:[%s1487_s1 + $0x70] sm:$0xff]  ;;  %v1110_v9 = vld [vmem:[%s1487_s1 + $0x68] sm:$0xff] }
   0x3   :  { %v1120_v2 = vld [vmem:[%s1487_s1 + $0xb8] sm:$0xff]  ;;  %574 = vmatpush.bf16.msra.mxu1 %v1112_v1  ;;  %v1119_v6 = vld [vmem:[%s1487_s1 + $0xb0] sm:$0xff]  ;;  %v1118_v10 = vld [vmem:[%s1487_s1 + $0xa8] sm:$0xff] }
   0x4   :  { %v1128_v3 = vld [vmem:[%s1487_s1 + $0xf8] sm:$0xff]  ;;  %588 = vmatpush.bf16.msra.mxu2 %v1120_v2  ;;  %v1127_v7 = vld [vmem:[%s1487_s1 + $0xf0] sm:$0xff]  ;;  %v1126_v11 = vld [vmem:[%s1487_s1 + $0xe8] sm:$0xff] }
   0x5   :  { %602 = vmatpush.bf16.msra.mxu3 %v1128_v3  ;;  %v1101_v12 = vld [vmem:[%s1487_s1 + $0x20] sm:$0xff]  ;;  %v1100_v16 = vld [vmem:[%s1487_s1 + $0x18] sm:$0xff]  ;;  %v1099_v20 = vld [vmem:[%s1487_s1 + $0x10] sm:$0xff] }
   0x6   :  { %561 = vmatpush.bf16.msra.mxu0 %v1103_v4  ;;  %v1109_v13 = vld [vmem:[%s1487_s1 + $0x60] sm:$0xff]  ;;  %v1108_v17 = vld [vmem:[%s1487_s1 + $0x58] sm:$0xff]  ;;  %v1107_v21 = vld [vmem:[%s1487_s1 + $0x50] sm:$0xff] }
   0x7   :  { %575 = vmatpush.bf16.msra.mxu1 %v1111_v5  ;;  %v1117_v14 = vld [vmem:[%s1487_s1 + $0xa0] sm:$0xff]  ;;  %v1116_v18 = vld [vmem:[%s1487_s1 + $0x98] sm:$0xff]  ;;  %v1115_v22 = vld [vmem:[%s1487_s1 + $0x90] sm:$0xff] }
   0x8   :  { %589 = vmatpush.bf16.msra.mxu2 %v1119_v6  ;;  %v1125_v15 = vld [vmem:[%s1487_s1 + $0xe0] sm:$0xff]  ;;  %v1124_v19 = vld [vmem:[%s1487_s1 + $0xd8] sm:$0xff]  ;;  %v1123_v23 = vld [vmem:[%s1487_s1 + $0xd0] sm:$0xff] }
   0x9   :  { %603 = vmatpush.bf16.msra.mxu3 %v1127_v7  ;;  %v1098_v24 = vld [vmem:[%s1487_s1 + $0x8] sm:$0xff]  ;;  %v1097_v28 = vld [vmem:[%s1487_s1] sm:$0xff]  ;;  %v1136_v32 = vld [vmem:[%s1487_s1 + $0x138] sm:$0xff] }
   0xa   :  { %562 = vmatpush.bf16.msra.mxu0 %v1102_v8  ;;  %v1106_v25 = vld [vmem:[%s1487_s1 + $0x48] sm:$0xff]  ;;  %v1105_v29 = vld [vmem:[%s1487_s1 + $0x40] sm:$0xff]  ;;  %v1144_v33 = vld [vmem:[%s1487_s1 + $0x178] sm:$0xff] }
   0xb   :  { %576 = vmatpush.bf16.msra.mxu1 %v1110_v9  ;;  %v1114_v26 = vld [vmem:[%s1487_s1 + $0x88] sm:$0xff]  ;;  %v1113_v30 = vld [vmem:[%s1487_s1 + $0x80] sm:$0xff]  ;;  %v22_v34 = vld [vmem:[%s1489_s0 + $0x10] sm:$0xff] }
   0xc   :  { %590 = vmatpush.bf16.msra.mxu2 %v1118_v10  ;;  %v1122_v27 = vld [vmem:[%s1487_s1 + $0xc8] sm:$0xff]  ;;  %v1121_v31 = vld [vmem:[%s1487_s1 + $0xc0] sm:$0xff]  ;;  %v30_v35 = vld [vmem:[%s1489_s0 + $0x50] sm:$0xff] }
   0xd   :  { %604 = vmatpush.bf16.msra.mxu3 %v1126_v11  ;;  %v20_v36 = vld [vmem:[%s1489_s0] sm:$0xff]  ;;  %v23_v38 = vld [vmem:[%s1489_s0 + $0x18] sm:$0xff]  ;;  %v21_v40 = vld [vmem:[%s1489_s0 + $0x8] sm:$0xff]  ;;  %v38_v44 = vpack.c.bf16 %v30_v35, %v22_v34 }
   0xe   :  { %563 = vmatpush.bf16.msra.mxu0 %v1101_v12  ;;  %v28_v37 = vld [vmem:[%s1489_s0 + $0x40] sm:$0xff]  ;;  %v31_v39 = vld [vmem:[%s1489_s0 + $0x58] sm:$0xff]  ;;  %v29_v41 = vld [vmem:[%s1489_s0 + $0x48] sm:$0xff] }
   0xf   :  { %577 = vmatpush.bf16.msra.mxu1 %v1109_v13  ;;  %v1152_v42 = vld [vmem:[%s1487_s1 + $0x1b8] sm:$0xff]  ;;  %v36_v45 = vpack.c.bf16 %v28_v37, %v20_v36  ;;  %v39_v46 = vpack.c.bf16 %v31_v39, %v23_v38  ;;  %v37_v47 = vpack.c.bf16 %v29_v41, %v21_v40  ;;  %v1135_v48 = vld [vmem:[%s1487_s1 + $0x130] sm:$0xff]  ;;  %v1134_v52 = vld [vmem:[%s1487_s1 + $0x128] sm:$0xff] }
  0x10   :  { %591 = vmatpush.bf16.msra.mxu2 %v1117_v14  ;;  %v1160_v43 = vld [vmem:[%s1487_s1 + $0x1f8] sm:$0xff]  ;;  %v1143_v49 = vld [vmem:[%s1487_s1 + $0x170] sm:$0xff]  ;;  %v1142_v53 = vld [vmem:[%s1487_s1 + $0x168] sm:$0xff] }
  0x11   :  { %605 = vmatpush.bf16.msra.mxu3 %v1125_v15  ;;  %v1151_v50 = vld [vmem:[%s1487_s1 + $0x1b0] sm:$0xff]  ;;  %v1150_v54 = vld [vmem:[%s1487_s1 + $0x1a8] sm:$0xff]  ;;  %v1133_v56 = vld [vmem:[%s1487_s1 + $0x120] sm:$0xff] }
  0x12   :  { %564 = vmatpush.bf16.msra.mxu0 %v1100_v16  ;;  %v1159_v51 = vld [vmem:[%s1487_s1 + $0x1f0] sm:$0xff]  ;;  %v1158_v55 = vld [vmem:[%s1487_s1 + $0x1e8] sm:$0xff]  ;;  %v1141_v57 = vld [vmem:[%s1487_s1 + $0x160] sm:$0xff] }
  0x13   :  { %578 = vmatpush.bf16.msra.mxu1 %v1108_v17  ;;  %v1149_v58 = vld [vmem:[%s1487_s1 + $0x1a0] sm:$0xff]  ;;  %v1132_v60 = vld [vmem:[%s1487_s1 + $0x118] sm:$0xff]  ;;  %v1131_v0 = vld [vmem:[%s1487_s1 + $0x110] sm:$0xff] }
  0x14   :  { %592 = vmatpush.bf16.msra.mxu2 %v1116_v18  ;;  %v1157_v59 = vld [vmem:[%s1487_s1 + $0x1e0] sm:$0xff]  ;;  %v1140_v61 = vld [vmem:[%s1487_s1 + $0x158] sm:$0xff]  ;;  %v1139_v1 = vld [vmem:[%s1487_s1 + $0x150] sm:$0xff] }
  0x15   :  { %606 = vmatpush.bf16.msra.mxu3 %v1124_v19  ;;  %v1148_v62 = vld [vmem:[%s1487_s1 + $0x198] sm:$0xff]  ;;  %v1147_v2 = vld [vmem:[%s1487_s1 + $0x190] sm:$0xff]  ;;  %v1130_v4 = vld [vmem:[%s1487_s1 + $0x108] sm:$0xff] }
  0x16   :  { %565 = vmatpush.bf16.msra.mxu0 %v1099_v20  ;;  %v1156_v63 = vld [vmem:[%s1487_s1 + $0x1d8] sm:$0xff]  ;;  %v1155_v3 = vld [vmem:[%s1487_s1 + $0x1d0] sm:$0xff]  ;;  %v1138_v5 = vld [vmem:[%s1487_s1 + $0x148] sm:$0xff] }
  0x17   :  { %579 = vmatpush.bf16.msra.mxu1 %v1107_v21  ;;  %v1146_v6 = vld [vmem:[%s1487_s1 + $0x188] sm:$0xff]  ;;  %v1129_v8 = vld [vmem:[%s1487_s1 + $0x100] sm:$0xff]  ;;  %v26_v16 = vld [vmem:[%s1489_s0 + $0x30] sm:$0xff] }
  0x18   :  { %593 = vmatpush.bf16.msra.mxu2 %v1115_v22  ;;  %v1154_v7 = vld [vmem:[%s1487_s1 + $0x1c8] sm:$0xff]  ;;  %v1137_v9 = vld [vmem:[%s1487_s1 + $0x140] sm:$0xff]  ;;  %v34_v17 = vld [vmem:[%s1489_s0 + $0x70] sm:$0xff] }
  0x19   :  { %607 = vmatpush.bf16.msra.mxu3 %v1123_v23  ;;  %v1145_v10 = vld [vmem:[%s1487_s1 + $0x180] sm:$0xff]  ;;  %v25_v14 = vld [vmem:[%s1489_s0 + $0x28] sm:$0xff]  ;;  %v27_v18 = vld [vmem:[%s1489_s0 + $0x38] sm:$0xff]  ;;  %v42_v22 = vpack.c.bf16 %v34_v17, %v26_v16 }
  0x1a   :  { %566 = vmatpush.bf16.msra.mxu0 %v1098_v24  ;;  %v1153_v11 = vld [vmem:[%s1487_s1 + $0x1c0] sm:$0xff]  ;;  %v33_v15 = vld [vmem:[%s1489_s0 + $0x68] sm:$0xff]  ;;  %v35_v19 = vld [vmem:[%s1489_s0 + $0x78] sm:$0xff] }
  0x1b   :  { %580 = vmatpush.bf16.msra.mxu1 %v1106_v25  ;;  %v24_v12 = vld [vmem:[%s1489_s0 + $0x20] sm:$0xff]  ;;  %v41_v21 = vpack.c.bf16 %v33_v15, %v25_v14  ;;  %v43_v23 = vpack.c.bf16 %v35_v19, %v27_v18  ;;  %v1168_v24 = vld [vmem:[%s1491_s3 + $0x38] sm:$0xff]  ;;  %v1167_v25 = vld [vmem:[%s1491_s3 + $0x30] sm:$0xff] }
  0x1c   :  { %594 = vmatpush.bf16.msra.mxu2 %v1114_v26  ;;  %v32_v13 = vld [vmem:[%s1489_s0 + $0x60] sm:$0xff]  ;;  %v1166_v26 = vld [vmem:[%s1491_s3 + $0x28] sm:$0xff] }
  0x1d   :  { %608 = vmatpush.bf16.msra.mxu3 %v1122_v27  ;;  %v40_v20 = vpack.c.bf16 %v32_v13, %v24_v12  ;;  %v1165_v27 = vld [vmem:[%s1491_s3 + $0x20] sm:$0xff] }
  0x1e   :  { %567 = vmatpush.bf16.msra.mxu0 %v1097_v28  ;;  %v1164_v28 = vld [vmem:[%s1491_s3 + $0x18] sm:$0xff]  ;;  %v1174_v34 = vld [vmem:[%s1488_s2] ss:$0 sm:$0xff] }
  0x1f   :  { %581 = vmatpush.bf16.msra.mxu1 %v1105_v29  ;;  %v1163_v29 = vld [vmem:[%s1491_s3 + $0x10] sm:$0xff] }
  0x20   :  { %595 = vmatpush.bf16.msra.mxu2 %v1113_v30 }
  0x21   :  { %609 = vmatpush.bf16.msra.mxu3 %v1121_v31  ;;  %568 = vmatmul.bf16.vlgmr.msra.gmra.mxu0 %v36_v45  ;;  %v1162_v31 = vld [vmem:[%s1491_s3 + $0x8] sm:$0xff] }
  0x22   :  { %616 = vmatpush.bf16.msrb.mxu0 %v1136_v32  ;;  %582 = vmatmul.bf16.vlgmr.msra.gmra.mxu1 %v37_v47 }
  0x23   :  { %630 = vmatpush.bf16.msrb.mxu1 %v1144_v33  ;;  %596 = vmatmul.bf16.vlgmr.msra.gmra.mxu2 %v38_v44  ;;  %v1161_v33 = vld [vmem:[%s1491_s3] sm:$0xff] }
  0x24   :  { %644 = vmatpush.bf16.msrb.mxu2 %v1152_v42  ;;  %610 = vmatmul.bf16.vlgmr.msra.gmra.mxu3 %v39_v46 }
  0x25   :  { %658 = vmatpush.bf16.msrb.mxu3 %v1160_v43 }
  0x26   :  { %617 = vmatpush.bf16.msrb.mxu0 %v1135_v48 }
  0x27   :  { %631 = vmatpush.bf16.msrb.mxu1 %v1143_v49 }
  0x28   :  { %645 = vmatpush.bf16.msrb.mxu2 %v1151_v50 }
  0x29   :  { %659 = vmatpush.bf16.msrb.mxu3 %v1159_v51 }
  0x2a   :  { %618 = vmatpush.bf16.msrb.mxu0 %v1134_v52 }
  0x2b   :  { %632 = vmatpush.bf16.msrb.mxu1 %v1142_v53 }
  0x2c   :  { %646 = vmatpush.bf16.msrb.mxu2 %v1150_v54 }
  0x2d   :  { %660 = vmatpush.bf16.msrb.mxu3 %v1158_v55 }
  0x2e   :  { %619 = vmatpush.bf16.msrb.mxu0 %v1133_v56 }
  0x2f   :  { %633 = vmatpush.bf16.msrb.mxu1 %v1141_v57 }
  0x30   :  { %647 = vmatpush.bf16.msrb.mxu2 %v1149_v58 }
  0x31   :  { %661 = vmatpush.bf16.msrb.mxu3 %v1157_v59 }
  0x32   :  { %620 = vmatpush.bf16.msrb.mxu0 %v1132_v60 }
  0x33   :  { %634 = vmatpush.bf16.msrb.mxu1 %v1140_v61 }
  0x34   :  { %648 = vmatpush.bf16.msrb.mxu2 %v1148_v62 }
  0x35   :  { %662 = vmatpush.bf16.msrb.mxu3 %v1156_v63 }
  0x36   :  { %621 = vmatpush.bf16.msrb.mxu0 %v1131_v0 }
  0x37   :  { %635 = vmatpush.bf16.msrb.mxu1 %v1139_v1 }
  0x38   :  { %649 = vmatpush.bf16.msrb.mxu2 %v1147_v2 }
  0x39   :  { %663 = vmatpush.bf16.msrb.mxu3 %v1155_v3 }
  0x3a   :  { %622 = vmatpush.bf16.msrb.mxu0 %v1130_v4  ;;  %v1175_v4 = vld [vmem:[%s1490_s4] ss:$0 sm:$0xff] }
  0x3b   :  { %636 = vmatpush.bf16.msrb.mxu1 %v1138_v5 }
  0x3c   :  { %650 = vmatpush.bf16.msrb.mxu2 %v1146_v6 }
  0x3d   :  { %664 = vmatpush.bf16.msrb.mxu3 %v1154_v7 }
  0x3e   :  { %623 = vmatpush.bf16.msrb.mxu0 %v1129_v8 }
  0x3f   :  { %637 = vmatpush.bf16.msrb.mxu1 %v1137_v9 }
  0x40   :  { %651 = vmatpush.bf16.msrb.mxu2 %v1145_v10 }
  0x41   :  { %665 = vmatpush.bf16.msrb.mxu3 %v1153_v11  ;;  %624 = vmatmul.bf16.vlgmr.msrb.gmra.mxu0 %v40_v20 }
  0x42   :  { %638 = vmatmul.bf16.vlgmr.msrb.gmra.mxu1 %v41_v21  ;;  %743 = vmatpush.bf16.msra.mxu0 %v1168_v24 }
  0x43   :  { %652 = vmatmul.bf16.vlgmr.msrb.gmra.mxu2 %v42_v22 }
  0x44   :  { %666 = vmatmul.bf16.vlgmr.msrb.gmra.mxu3 %v43_v23 }
  0x46   :  { %744 = vmatpush.bf16.msra.mxu0 %v1167_v25 }
  0x4a   :  { %745 = vmatpush.bf16.msra.mxu0 %v1166_v26 }
  0x4e   :  { %746 = vmatpush.bf16.msra.mxu0 %v1165_v27 }
  0x52   :  { %747 = vmatpush.bf16.msra.mxu0 %v1164_v28 }
  0x56   :  { %748 = vmatpush.bf16.msra.mxu0 %v1163_v29 }
  0x5a   :  { %749 = vmatpush.bf16.msra.mxu0 %v1162_v31 }
  0x5e   :  { %750 = vmatpush.bf16.msra.mxu0 %v1161_v33 }
  0x9e   :  { %v569_v30 = vpop.f32.mrf.mxu0 }
  0x9f   :  { %v583_v32 = vpop.f32.mrf.mxu1  ;;  %v570_v37 = vadd.f32 %v1174_v34, %v569_v30 }
  0xa1   :  { %v584_v40 = vadd.f32 %v583_v32, %v570_v37 }
  0xa6   :  { %v597_v35 = vpop.f32.mrf.mxu2  ;;  %v571_v38 = vpop.f32.mrf.mxu0 }
  0xa7   :  { %v611_v36 = vpop.f32.mrf.mxu3  ;;  %v585_v39 = vpop.f32.mrf.mxu1  ;;  %v572_v41 = vadd.f32 %v1174_v34, %v571_v38  ;;  %v598_v44 = vadd.f32 %v597_v35, %v584_v40 }
  0xa9   :  { %v586_v45 = vadd.f32 %v585_v39, %v572_v41  ;;  %v612_v48 = vadd.f32 %v611_v36, %v598_v44 }
  0xae   :  { %v599_v42 = vpop.f32.mrf.mxu2 }
  0xaf   :  { %v613_v43 = vpop.f32.mrf.mxu3  ;;  %v600_v49 = vadd.f32 %v599_v42, %v586_v45 }
  0xb1   :  { %v614_v53 = vadd.f32 %v613_v43, %v600_v49 }
  0xbe   :  { %v625_v46 = vpop.f32.mrf.mxu0 }
  0xbf   :  { %v639_v47 = vpop.f32.mrf.mxu1  ;;  %v626_v50 = vadd.f32 %v625_v46, %v612_v48 }
  0xc1   :  { %v640_v55 = vadd.f32 %v639_v47, %v626_v50 }
  0xc6   :  { %v653_v51 = vpop.f32.mrf.mxu2  ;;  %v627_v54 = vpop.f32.mrf.mxu0 }
  0xc7   :  { %v667_v52 = vpop.f32.mrf.mxu3  ;;  %v628_v56 = vadd.f32 %v627_v54, %v614_v53  ;;  %v654_v57 = vadd.f32 %v653_v51, %v640_v55  ;;  %v641_v58 = vpop.f32.mrf.mxu1 }
  0xc9   :  { %v642_v59 = vadd.f32 %v641_v58, %v628_v56  ;;  %v668_v61 = vadd.f32 %v667_v52, %v654_v57 }
  0xcb   :  { %v672_v1 = vmax.f32 %v668_v61, 0.0 }
  0xce   :  { %v655_v60 = vpop.f32.mrf.mxu2 }
  0xcf   :  { %v656_v62 = vadd.f32 %v655_v60, %v642_v59  ;;  %v669_v63 = vpop.f32.mrf.mxu3 }
  0xd1   :  { %v670_v0 = vadd.f32 %v669_v63, %v656_v62 }
  0xd3   :  { %v673_v2 = vmax.f32 %v670_v0, 0.0 }
  0xd5   :  { %v674_v3 = vpack.c.bf16 %v673_v2, %v672_v1 }
  0xd7   :  { %751 = vmatmul.bf16.vlgmr.msra.gmra.mxu0 %v674_v3 }
 0x154   :  { %v752_v5 = vpop.f32.mrf.mxu0 }
 0x155   :  { %v753_v6 = vadd.f32 %v1175_v4, %v752_v5 }
 0x157   :  { %757 = vmax.xlane.f32.xlu0 %v753_v6 }
 0x15c   :  { %v754_v7 = vpop.f32.mrf.mxu0 }
 0x15d   :  { %v755_v8 = vadd.f32 %v1175_v4, %v754_v7 }
 0x15f   :  { %759 = vmax.xlane.f32.xlu0 %v755_v8 }
 0x1ca   :  { %v758_v9 = vpop.xlane.xlu0 %757 }
 0x1cb   :  { %v761_v10 = vsub.f32 %v753_v6, %v758_v9 }
 0x1cd   :  { %v763_v11 = vmul.f32 1.442695, %v761_v10 }
 0x1cf   :  { %1176 = vpow2.f32 %v763_v11 }
 0x1d2   :  { %v760_v12 = vpop.xlane.xlu0 %759 }
 0x1d3   :  { %v762_v13 = vsub.f32 %v755_v8, %v760_v12 }
 0x1d5   :  { %v1177_v14 = vpop.eup %1176  ;;  %v765_v15 = vmul.f32 1.442695, %v762_v13 }
 0x1d6   :  { %767 = vadd.xlane.f32.xlu1 %v1177_v14 }
 0x1d7   :  { %1178 = vpow2.f32 %v765_v15 }
 0x1dd   :  { %v1179_v16 = vpop.eup %1178 }
 0x1de   :  { %769 = vadd.xlane.f32.xlu1 %v1179_v16 }
 0x249   :  { %v768_v17 = vpop.xlane.xlu1 %767 }
 0x24a   :  { %1180 = vrcp.f32 %v768_v17  ;;  %v782_v26 = vand.u32 2147483648, %v768_v17  ;;  %vm776_vm1 = vweird.f32 %v768_v17  ;;  %v780_v27 = vand.u32 2147483647, %v768_v17 }
 0x24c   :  { %v783_v33 = vor.u32 1.1754944e-38, %v782_v26  ;;  %vm781_vm4 = vcmp.eq.f32.partialorder %v780_v27, 8.507059e+37 }
 0x250   :  { %v1181_v18 = vpop.eup %1180 }
 0x251   :  { %v772_v19 = vmul.f32 %v1181_v18, %v768_v17  ;;  %v770_v20 = vpop.xlane.xlu1 %769  ;;  %vm777_vm0 = vweird.f32 %v1181_v18 }
 0x252   :  { %1182 = vrcp.f32 %v770_v20  ;;  %vm778_vm2 = vmor %vm776_vm1, %vm777_vm0  ;;  %v797_v29 = vand.u32 2147483648, %v770_v20  ;;  %v795_v32 = vand.u32 2147483647, %v770_v20  ;;  %vm791_vm5 = vweird.f32 %v770_v20 }
 0x253   :  { %v773_v21 = vsub.f32 1.0, %v772_v19 }
 0x254   :  { %v798_v36 = vor.u32 1.1754944e-38, %v797_v29  ;;  %vm796_vm7 = vcmp.eq.f32.partialorder %v795_v32, 8.507059e+37 }
 0x255   :  { %v774_v22 = vmul.f32 %v1181_v18, %v773_v21 }
 0x257   :  { %v775_v24 = vadd.f32 %v1181_v18, %v774_v22 }
 0x258   :  { %v1183_v23 = vpop.eup %1182 }
 0x259   :  { %v787_v25 = vmul.f32 %v1183_v23, %v770_v20  ;;  %v779_v30 = vsel %vm778_vm2, %v1181_v18, %v775_v24  ;;  %vm792_vm3 = vweird.f32 %v1183_v23 }
 0x25a   :  { %v784_v35 = vsel %vm781_vm4, %v783_v33, %v779_v30  ;;  %vm793_vm6 = vmor %vm791_vm5, %vm792_vm3 }
 0x25b   :  { %v788_v28 = vsub.f32 1.0, %v787_v25  ;;  %v785_v39 = vmul.f32 %v1177_v14, %v784_v35 }
 0x25d   :  { %v789_v31 = vmul.f32 %v1183_v23, %v788_v28 }
 0x25f   :  { %v790_v34 = vadd.f32 %v1183_v23, %v789_v31 }
 0x261   :  { %v794_v37 = vsel %vm793_vm6, %v1183_v23, %v790_v34 }
 0x262   :  { %v799_v38 = vsel %vm796_vm7, %v798_v36, %v794_v37 }
 0x263   :  { %v800_v40 = vmul.f32 %v1179_v16, %v799_v38 }
 0x265   :  { %v1172_v41 = vpack.c.bf16 %v800_v40, %v785_v39 }
 0x267   :  { %1173 = vst [vmem:[%s1492_s5] sm:$0xff] %v1172_v41  }

</bundles_post_ra>
